<compile_context>
chip_gen: v5e
topology: v5e:2x2
jax: 0.10.0
libtpu: 0.0.40
codegen_flags: <defaults>
</compile_context>

<pallas_src>
import math
import functools

import jax
import jax.numpy as jnp
from jax import lax
from jax.experimental import pallas as pl
from jax.experimental.pallas import tpu as pltpu


_LANE = 128


def _round_up(x: int, m: int) -> int:
    return ((x + m - 1) // m) * m


def _sublane_multiple(dtype) -> int:
    # Minimum second-to-last tile dim per dtype (f32: 8, bf16: 16, int8/fp8: 32).
    itemsize = jnp.dtype(dtype).itemsize
    return {4: 8, 2: 16, 1: 32}.get(itemsize, 8)


def _linear_kernel(x_ref, w_ref, b_ref, o_ref, acc_ref):
    # x_ref: (tm, tk)   w_ref: (tn, tk)   b_ref: (1, tn)
    # o_ref: (tm, tn)   acc_ref: (tm, tn) f32 scratch
    k = pl.program_id(2)

    @pl.when(k == 0)
    def _init():
        acc_ref[...] = jnp.zeros_like(acc_ref)

    # Contract on the last dim of both operands: (tm, tk) x (tn, tk) -> (tm, tn).
    # This is exactly x @ W.T with the weight kept in its [N, K] layout; the MXU
    # handles the transposed-RHS contraction natively (no vxpose per k-step).
    acc_ref[...] += lax.dot_general(
        x_ref[...],
        w_ref[...],
        dimension_numbers=(((1,), (1,)), ((), ())),
        preferred_element_type=jnp.float32,
    )

    @pl.when(k == pl.num_programs(2) - 1)
    def _finalize():
        # Bias added exactly once per output tile; cast rides the VPU.
        o_ref[...] = (acc_ref[...] + b_ref[...].astype(jnp.float32)).astype(o_ref.dtype)


def prepare_linear_params(weight, bias, *, tn: int = 512, tk: int = 1024):
    """One-time weight/bias padding & layout (call once, OUTSIDE the hot path).

    weight: [out_features, in_features]  (PyTorch nn.Linear layout, NOT transposed)
    bias:   [out_features]

    Returns (w_padded [Np, Kp], bias_padded [1, Np], out_features, tn, tk).
    """
    N, K = weight.shape
    assert bias.shape == (N,), "bias shape mismatch"
    tn = min(tn, _round_up(N, _LANE))   # lane-dense output / weight-N tile
    tk = min(tk, _round_up(K, _LANE))   # lane-aligned contraction tile
    Np = _round_up(N, tn)
    Kp = _round_up(K, tk)
    w_p = weight if (Np == N and Kp == K) else jnp.pad(weight, ((0, Np - N), (0, Kp - K)))
    b_p = (bias if Np == N else jnp.pad(bias, (0, Np - N))).reshape(1, Np)
    return w_p, b_p, N, tn, tk


@functools.partial(jax.jit, static_argnames=("n_out", "tm", "tn", "tk"))
def linear_forward(x, w_p, b_p, *, n_out: int, tm: int = 512, tn: int = 512, tk: int = 1024):
    """y = x @ weight.T + bias using a tiled, output-stationary Pallas TPU kernel.

    x:   [B, in_features]
    w_p: [Np, Kp]  pre-padded weight from prepare_linear_params
    b_p: [1, Np]   pre-padded bias
    """
    B, K = x.shape
    Np, Kp = w_p.shape
    assert Np % tn == 0 and Kp % tk == 0, "w_p must come from prepare_linear_params"
    assert K <= Kp, "in_features mismatch"

    # --- M tile: dtype-aware sublane rounding, clamped to the batch ---
    sub = _sublane_multiple(x.dtype)
    tm = max(sub, min(tm, _round_up(B, sub)))

    # --- only K is zero-padded per call (K-tail garbage would corrupt valid outputs);
    #     M/N ragged edges are handled by the cdiv grid + masked partial writes ---
    x_p = x if Kp == K else jnp.pad(x, ((0, 0), (0, Kp - K)))

    grid_m = pl.cdiv(B, tm)
    # Megacore (v7x): keep at least one parallel axis with >= 2 steps for small batch.
    if grid_m == 1 and Np // tn == 1 and tn >= 256 and tn % 256 == 0:
        tn = tn // 2
    grid = (grid_m, Np // tn, Kp // tk)

    # --- VMEM budget: x/w/bias/out double-buffers + f32 accumulator.
    #     Capped at 64 MiB so the same config fits v7x physical VMEM. ---
    in_item = jnp.dtype(x.dtype).itemsize
    w_item = jnp.dtype(w_p.dtype).itemsize
    vmem_bytes = (
        2 * tm * tk * in_item        # x double-buffer
        + 2 * tn * tk * w_item       # weight double-buffer
        + 2 * 1 * tn * w_item        # bias double-buffer
        + 2 * tm * tn * in_item      # out double-buffer
        + tm * tn * 4                # f32 accumulator scratch
    )
    vmem_limit = min(max(vmem_bytes * 5 // 4 + (1 << 20), 16 << 20), 64 << 20)

    cost = pl.CostEstimate(
        flops=2 * B * Np * Kp,
        transcendentals=0,
        bytes_accessed=(grid[1] * B * Kp * in_item        # x re-read per N tile
                        + grid_m * Np * Kp * w_item       # weight re-read per M tile
                        + B * Np * in_item),              # output write
    )

    out = pl.pallas_call(
        _linear_kernel,
        out_shape=jax.ShapeDtypeStruct((B, Np), x.dtype),
        grid_spec=pltpu.PrefetchScalarGridSpec(
            num_scalar_prefetch=0,
            grid=grid,
            in_specs=[
                pl.BlockSpec((tm, tk), lambda i, j, k: (i, k)),   # x tile
                pl.BlockSpec((tn, tk), lambda i, j, k: (j, k)),   # weight tile [N, K]
                pl.BlockSpec((1, tn), lambda i, j, k: (0, j)),    # bias tile (N only)
            ],
            out_specs=pl.BlockSpec((tm, tn), lambda i, j, k: (i, j)),
            scratch_shapes=[pltpu.VMEM((tm, tn), jnp.float32)],
        ),
        compiler_params=pltpu.CompilerParams(
            dimension_semantics=("parallel", "parallel", "arbitrary"),
            vmem_limit_bytes=int(vmem_limit),
        ),
        cost_estimate=cost,
    )(x_p, w_p, b_p)

    # Strip the (zero-initialized) N padding; M was never padded.
    return out if Np == n_out else out[:, :n_out]


if __name__ == "__main__":
    # Module config: Linear(in_features=32, out_features=16)
    in_features = 32
    out_features = 16
    batch = 8

    key = jax.random.PRNGKey(0)
    kx, kw, kb = jax.random.split(key, 3)

    # Deterministic parameter init mimicking nn.Linear's U(-1/sqrt(fan_in), 1/sqrt(fan_in))
    bound = 1.0 / math.sqrt(in_features)
    weight = jax.random.uniform(
        kw, (out_features, in_features), jnp.float32, -bound, bound
    )
    bias = jax.random.uniform(kb, (out_features,), jnp.float32, -bound, bound)

    x = jax.random.normal(kx, (batch, in_features), jnp.float32)

    # One-time weight/bias preparation (outside the per-call hot path).
    w_p, b_p, n_out, tn, tk = prepare_linear_params(weight, bias)

    out = linear_forward(x, w_p, b_p, n_out=n_out, tm=512, tn=tn, tk=tk)
    out = jax.block_until_ready(out)

    # Sanity check against plain-JAX reference
    ref = x @ weight.T + bias
    assert out.shape == (batch, out_features)
    assert jnp.allclose(out, ref, atol=1e-5, rtol=1e-5), "mismatch vs reference"

    print("KERNEL_OK")
</pallas_src>

<mosaic_0001>
module attributes {stable_mosaic.version = 11 : i64} {
  func.func @_linear_kernel(%arg0: i32, %arg1: i32, %arg2: i32, %arg3: memref<8x128xf32, #tpu.memory_space<vmem>>, %arg4: memref<128x128xf32, #tpu.memory_space<vmem>>, %arg5: memref<1x128xf32, #tpu.memory_space<vmem>>, %arg6: memref<8x128xf32, #tpu.memory_space<vmem>>, %arg7: memref<8x128xf32, #tpu.memory_space<vmem>>) attributes {dimension_semantics = [#tpu.dimension_semantics<parallel>, #tpu.dimension_semantics<parallel>, #tpu.dimension_semantics<arbitrary>], iteration_bounds = array<i64: 1, 1, 1>, scalar_prefetch = 0 : i64, scratch_operands = 1 : i64, tpu.core_type = #tpu.core_type<tc>, window_params = [{transform_indices = @transform_0, window_bounds = array<i64: 8, 128>}, {transform_indices = @transform_1, window_bounds = array<i64: 128, 128>}, {transform_indices = @transform_2, window_bounds = array<i64: 1, 128>}, {transform_indices = @transform_3, window_bounds = array<i64: 8, 128>}]} {
    %c0_i32 = arith.constant 0 : i32
    %0 = arith.cmpi eq, %arg2, %c0_i32 : i32
    %1 = arith.extui %0 : i1 to i32
    %c0_i32_0 = arith.constant 0 : i32
    %2 = arith.cmpi ne, %1, %c0_i32_0 : i32
    scf.if %2 {
      %cst_10 = arith.constant 0.000000e+00 : f32
      %12 = vector.broadcast %cst_10 : f32 to vector<8x128xf32>
      %c0_11 = arith.constant 0 : index
      %c0_12 = arith.constant 0 : index
      %13 = vector.load %arg7[%c0_11, %c0_12] : memref<8x128xf32, #tpu.memory_space<vmem>>, vector<8x128xf32>
      tpu.vector_store %arg7[%c0_11, %c0_12], %12 {strides = array<i32>} : memref<8x128xf32, #tpu.memory_space<vmem>>, vector<8x128xf32>,
    } else {
    }
    %c0 = arith.constant 0 : index
    %c0_1 = arith.constant 0 : index
    %3 = vector.load %arg7[%c0, %c0_1] : memref<8x128xf32, #tpu.memory_space<vmem>>, vector<8x128xf32>
    %c0_2 = arith.constant 0 : index
    %c0_3 = arith.constant 0 : index
    %4 = vector.load %arg3[%c0_2, %c0_3] : memref<8x128xf32, #tpu.memory_space<vmem>>, vector<8x128xf32>
    %c0_4 = arith.constant 0 : index
    %c0_5 = arith.constant 0 : index
    %5 = vector.load %arg4[%c0_4, %c0_5] : memref<128x128xf32, #tpu.memory_space<vmem>>, vector<128x128xf32>
    %cst = arith.constant dense<0.000000e+00> : vector<8x128xf32>
    %6 = tpu.matmul %4, %5, %cst {dimension_numbers = #tpu.dot_dimension_numbers<[1], [1], [0], [0], [0, 0, 1, 0], [], []>} : vector<8x128xf32>, vector<128x128xf32>, vector<8x128xf32> -> vector<8x128xf32>
    %7 = arith.addf %3, %6 : vector<8x128xf32>
    %c0_6 = arith.constant 0 : index
    %c0_7 = arith.constant 0 : index
    %8 = vector.load %arg7[%c0_6, %c0_7] : memref<8x128xf32, #tpu.memory_space<vmem>>, vector<8x128xf32>
    tpu.vector_store %arg7[%c0_6, %c0_7], %7 {strides = array<i32>} : memref<8x128xf32, #tpu.memory_space<vmem>>, vector<8x128xf32>,
    %c0_i32_8 = arith.constant 0 : i32
    %9 = arith.cmpi eq, %arg2, %c0_i32_8 : i32
    %10 = arith.extui %9 : i1 to i32
    %c0_i32_9 = arith.constant 0 : i32
    %11 = arith.cmpi ne, %10, %c0_i32_9 : i32
    scf.if %11 {
      %c0_10 = arith.constant 0 : index
      %c0_11 = arith.constant 0 : index
      %12 = vector.load %arg7[%c0_10, %c0_11] : memref<8x128xf32, #tpu.memory_space<vmem>>, vector<8x128xf32>
      %c0_12 = arith.constant 0 : index
      %c0_13 = arith.constant 0 : index
      %13 = vector.load %arg5[%c0_12, %c0_13] : memref<1x128xf32, #tpu.memory_space<vmem>>, vector<1x128xf32>
      %14 = vector.broadcast %13 : vector<1x128xf32> to vector<8x128xf32>
      %15 = arith.addf %12, %14 : vector<8x128xf32>
      %c0_14 = arith.constant 0 : index
      %c0_15 = arith.constant 0 : index
      %16 = vector.load %arg6[%c0_14, %c0_15] : memref<8x128xf32, #tpu.memory_space<vmem>>, vector<8x128xf32>
      tpu.vector_store %arg6[%c0_14, %c0_15], %15 {strides = array<i32>} : memref<8x128xf32, #tpu.memory_space<vmem>>, vector<8x128xf32>,
    } else {
    }
    return
  }
  func.func @transform_0(%arg0: i32, %arg1: i32, %arg2: i32) -> (i32, i32) {
    %c0_i32 = arith.constant 0 : i32
    return %arg0, %arg2 : i32, i32
  }
  func.func @transform_1(%arg0: i32, %arg1: i32, %arg2: i32) -> (i32, i32) {
    %c0_i32 = arith.constant 0 : i32
    return %arg1, %arg2 : i32, i32
  }
  func.func @transform_2(%arg0: i32, %arg1: i32, %arg2: i32) -> (i32, i32) {
    %c0_i32 = arith.constant 0 : i32
    %c0_i32_0 = arith.constant 0 : i32
    return %c0_i32, %arg1 : i32, i32
  }
  func.func @transform_3(%arg0: i32, %arg1: i32, %arg2: i32) -> (i32, i32) {
    %c0_i32 = arith.constant 0 : i32
    return %arg0, %arg1 : i32, i32
  }
}

</mosaic_0001>

<bundles_post_ra>
// kernel: linear_forward.1
= control target key start
LH: loop header
LB: loop body
LE: loop exit
PB: predicated region body
PF: predicated region fallthrough
CT: control target
= control target key end

     0   :  { %8 = vsyncpa [#allocation4], 0  ;;  %s196_s0 = inlined_call_operand.vmem [shape: f32[8,128], index: 0, kind: input, shape index: {}]   ;;  %s197_s1 = inlined_call_operand.hbm [shape: f32[128,128], index: 1, kind: input, shape index: {}]   ;;  %s198_s2 = inlined_call_operand.vmem [shape: f32[1,128], index: 2, kind: input, shape index: {}]   ;;  %s199_s3 = inlined_call_operand.hbm [shape: f32[8,128], index: 3, kind: output, shape index: {}]  }
   0x1   :  { %9 = vsyncpa [#allocation5], 0  ;;  %s16_s14 = sshll.u32 %s197_s1, 4  ;;  %s160_s15 = smov [#allocation3]   ;;  %s17_s14 = int_to_ptr.hbm [resolvable:$true] %s16_s14 }
   0x2   :  { %s18_s16 = sshll.u32 %s160_s15, 4  ;;  %s161_s17 = smov 128   ;;  %s19_s16 = int_to_ptr.vmem [resolvable:$true] %s18_s16 }
   0x3   :  { %s162_s18 = smov 8  }
   0x4   :  { %24 = dma.hbm_to_vmem [thread:$0]  %s17_s14, 2048, %s19_s16, [#allocation4], %s161_s17, %s161_s17, %s162_s18  }
   0x5   :  { %156 = dma.done.wait [#allocation4], 2048  }
   0x6   :  { %157 = vsyncadd [#allocation4], 4294965248  ;;  %v53_v0 = vld [vmem:[#allocation3 + $0x78] sm:$0xff]  ;;  %v52_v1 = vld [vmem:[#allocation3 + $0x70] sm:$0xff]  ;;  %s163_s22 = smov [#allocation6]   ;;  %s93_s26 = sshll.u32 %s199_s3, 4  ;;  %s94_s26 = int_to_ptr.hbm [resolvable:$true] %s93_s26 }
   0x7   :  { %54 = vmatpush.xpose.msra.mxu0 %v53_v0  ;;  %v51_v2 = vld [vmem:[#allocation3 + $0x68] sm:$0xff]  ;;  %v50_v3 = vld [vmem:[#allocation3 + $0x60] sm:$0xff]  ;;  %v49_v4 = vld [vmem:[#allocation3 + $0x58] sm:$0xff]  ;;  %s91_s23 = sshll.u32 %s163_s22, 4  ;;  %s92_s23 = int_to_ptr.vmem [resolvable:$true] %s91_s23 }
   0x8   :  { %v48_v5 = vld [vmem:[#allocation3 + $0x50] sm:$0xff]  ;;  %v47_v6 = vld [vmem:[#allocation3 + $0x48] sm:$0xff]  ;;  %v46_v7 = vld [vmem:[#allocation3 + $0x40] sm:$0xff] }
   0x9   :  { %v45_v8 = vld [vmem:[#allocation3 + $0x38] sm:$0xff]  ;;  %v44_v9 = vld [vmem:[#allocation3 + $0x30] sm:$0xff]  ;;  %v43_v10 = vld [vmem:[#allocation3 + $0x28] sm:$0xff] }
   0xa   :  { %v42_v11 = vld [vmem:[#allocation3 + $0x20] sm:$0xff]  ;;  %v41_v12 = vld [vmem:[#allocation3 + $0x18] sm:$0xff]  ;;  %v40_v13 = vld [vmem:[#allocation3 + $0x10] sm:$0xff] }
   0xb   :  { %55 = vmatpush.xpose.msra.mxu0 %v52_v1  ;;  %v39_v14 = vld [vmem:[#allocation3 + $0x8] sm:$0xff]  ;;  %v38_v15 = vld [vmem:[#allocation3] sm:$0xff] }
   0xc   :  { %v37_v16 = vld [vmem:[%s196_s0] sm:$0xff] }
   0xd   :  { %v107_v17 = vld [vmem:[%s198_s2] ss:$0 sm:$0xff] }
   0xf   :  { %56 = vmatpush.xpose.msra.mxu0 %v51_v2 }
  0x13   :  { %57 = vmatpush.xpose.msra.mxu0 %v50_v3 }
  0x17   :  { %58 = vmatpush.xpose.msra.mxu0 %v49_v4 }
  0x1b   :  { %59 = vmatpush.xpose.msra.mxu0 %v48_v5 }
  0x1f   :  { %60 = vmatpush.xpose.msra.mxu0 %v47_v6 }
  0x23   :  { %61 = vmatpush.xpose.msra.mxu0 %v46_v7 }
  0x27   :  { %62 = vmatpush.xpose.msra.mxu0 %v45_v8 }
  0x2b   :  { %63 = vmatpush.xpose.msra.mxu0 %v44_v9 }
  0x2f   :  { %64 = vmatpush.xpose.msra.mxu0 %v43_v10 }
  0x33   :  { %65 = vmatpush.xpose.msra.mxu0 %v42_v11 }
  0x37   :  { %66 = vmatpush.xpose.msra.mxu0 %v41_v12 }
  0x3b   :  { %67 = vmatpush.xpose.msra.mxu0 %v40_v13 }
  0x3f   :  { %68 = vmatpush.xpose.msra.mxu0 %v39_v14 }
  0x43   :  { %69 = vmatpush.xpose.msra.mxu0 %v38_v15 }
  0x46   :  { %70 = vmatmul.f32.vlgmr.msra.gmra.mxu0 %v37_v16 }
  0xc3   :  { %v71_v18 = vpop.f32.mrf.mxu0 }
  0xc4   :  { %v84_v19 = vadd.f32 %v107_v17, %v71_v18 }
  0xc6   :  { %85 = vst [vmem:[#allocation6] sm:$0xff] %v84_v19 }
  0xc7   :  { %96 = dma.vmem_to_hbm [thread:$0]  %s92_s23, 128, %s94_s26, [#allocation5]  }
  0xc8   :  { %158 = dma.done.wait [#allocation5], 128  }
  0xc9   :  { %159 = vsyncadd [#allocation5], 4294967168 }
  0xca   :  { %101 = vsyncpa [#allocation4], 1 }
  0xcb   :  { %102 = vsyncpa [#allocation5], 1 }

</bundles_post_ra>
